<compile_context>
chip_gen: v5e
topology: v5e:2x2
jax: 0.10.0
libtpu: 0.0.40
codegen_flags: <defaults>
</compile_context>

<pallas_src>
import jax
import jax.numpy as jnp
from jax.experimental import pallas as pl
from jax.experimental.pallas import tpu as pltpu

_LANE = 128


def _round_up(x, m):
    return -(-x // m) * m


def lattice_mp_kernel(v_ref, na_ref,
                      w1_ref, b1_ref,
                      w2_ref, b2_ref,
                      w_ref, b_ref,
                      o_ref):
    """One grid step == one lattice problem; all operand tiles live in VMEM."""
    v = v_ref[...]                                  # [N, Dp]

    # ResidualBlock: x2 = relu(lin2(relu(lin1(v)))); v_res = relu(v + x2)
    x1 = jnp.maximum(
        jnp.dot(v, w1_ref[...], preferred_element_type=jnp.float32) + b1_ref[...], 0.0)
    x2 = jnp.maximum(
        jnp.dot(x1, w2_ref[...], preferred_element_type=jnp.float32) + b2_ref[...], 0.0)
    v_res = jnp.maximum(v + x2, 0.0)

    # Shared projection (matmul associativity):
    #   t  = v_res @ W
    #   v1 = relu(t + b)
    #   v2 = relu(na_cc @ t + b)   ==  relu((na_cc @ v_res) @ W + b)
    t = jnp.dot(v_res, w_ref[...], preferred_element_type=jnp.float32)
    b = b_ref[...]
    v1 = jnp.maximum(t + b, 0.0)
    agg = jnp.dot(na_ref[...], t, preferred_element_type=jnp.float32)
    v2 = jnp.maximum(agg + b, 0.0)

    o_ref[...] = (v1 + v2).astype(o_ref.dtype)


def _pad_features(x, dpad):
    d = x.shape[-1]
    if d == dpad:
        return x
    widths = [(0, 0)] * (x.ndim - 1) + [(0, dpad - d)]
    return jnp.pad(x, widths)


def _pad_params(params, dpad):
    """Zero-pad [in,out] weights and [1,out] biases to the lane-dense width."""
    def pad_w(w):
        pi, po = dpad - w.shape[0], dpad - w.shape[1]
        return w if (pi == 0 and po == 0) else jnp.pad(w, ((0, pi), (0, po)))
    return {
        "w1": pad_w(params["w1"]), "b1": _pad_features(params["b1"], dpad),
        "w2": pad_w(params["w2"]), "b2": _pad_features(params["b2"], dpad),
        "w":  pad_w(params["w"]),  "b":  _pad_features(params["b"], dpad),
    }


def lattice_mp_block_batched(v_c, na_cc, params):
    """Batched forward.

    v_c:   [B, N, dim]  float32  (rows = lattice cells, cols = features)
    na_cc: [B, N, N]    float32
    params: dict with w1,b1,w2,b2,w,b. Weights stored transposed ([in,out]) so
            the kernel computes y = x @ W_t + b, matching torch's x @ W.T + b.
    returns [B, N, dim]
    """
    B, N, dim = v_c.shape
    assert na_cc.shape == (B, N, N)

    dpad = _round_up(dim, _LANE)                    # lane-dense feature width
    v_p = _pad_features(v_c, dpad)
    p = _pad_params(params, dpad)

    w_spec = pl.BlockSpec((dpad, dpad), lambda b: (0, 0))   # VMEM-resident weights
    b_spec = pl.BlockSpec((1, dpad), lambda b: (0, 0))

    out = pl.pallas_call(
        lattice_mp_kernel,
        out_shape=jax.ShapeDtypeStruct((B, N, dpad), jnp.float32),
        grid=(B,),
        in_specs=[
            pl.BlockSpec((None, N, dpad), lambda b: (b, 0, 0)),   # v_c
            pl.BlockSpec((None, N, N), lambda b: (b, 0, 0)),      # na_cc
            w_spec, b_spec,                                        # lin1
            w_spec, b_spec,                                        # lin2
            w_spec, b_spec,                                        # lin (shared by v1/v2)
        ],
        out_specs=pl.BlockSpec((None, N, dpad), lambda b: (b, 0, 0)),
        compiler_params=pltpu.CompilerParams(
            dimension_semantics=("parallel",),      # batch axis shards across 2 TCs on v7x
            vmem_limit_bytes=64 * 1024 * 1024,
        ),
    )(v_p, na_cc,
      p["w1"], p["b1"], p["w2"], p["b2"], p["w"], p["b"])

    return out[..., :dim]


def lattice_mp_block(v_c, na_cc, params):
    """Unbatched forward matching the PyTorch signature: v_c [N,dim], na_cc [N,N]."""
    return lattice_mp_block_batched(v_c[None], na_cc[None], params)[0]


def init_params(key, dim):
    """Deterministic init mimicking torch.nn.Linear default U(-1/sqrt(dim), 1/sqrt(dim))."""
    bound = 1.0 / (dim ** 0.5)
    keys = jax.random.split(key, 6)
    u = lambda k, shape: jax.random.uniform(k, shape, jnp.float32, -bound, bound)
    # stored as [in, out] (i.e. already W.T relative to torch layout)
    return {
        "w1": u(keys[0], (dim, dim)), "b1": u(keys[1], (1, dim)),
        "w2": u(keys[2], (dim, dim)), "b2": u(keys[3], (1, dim)),
        "w":  u(keys[4], (dim, dim)), "b":  u(keys[5], (1, dim)),
    }


def reference(v_c, na_cc, p):
    """Pure-JAX reference mirroring the PyTorch forward (works batched too)."""
    relu = lambda x: jnp.maximum(x, 0.0)
    x1 = relu(v_c @ p["w1"] + p["b1"])
    x2 = relu(x1 @ p["w2"] + p["b2"])
    v = relu(v_c + x2)
    v1 = relu(v @ p["w"] + p["b"])
    v2 = relu((na_cc @ v) @ p["w"] + p["b"])
    return v1 + v2


if __name__ == "__main__":
    B, N, dim = 4, 8, 32
    key = jax.random.PRNGKey(0)
    k_v, k_a, k_p = jax.random.split(key, 3)

    v_c = jax.random.normal(k_v, (B, N, dim), jnp.float32)
    na_cc = jax.random.normal(k_a, (B, N, N), jnp.float32)
    params = init_params(k_p, dim)

    # Batched path: one pallas_call for all B problems.
    out_b = jax.block_until_ready(lattice_mp_block_batched(v_c, na_cc, params))
    ref_b = reference(v_c, na_cc, params)
    assert out_b.shape == (B, N, dim)
    assert jnp.allclose(out_b, ref_b, atol=1e-4, rtol=1e-4), "batched mismatch vs reference"

    # Unbatched path matching the PyTorch module signature.
    out_1 = jax.block_until_ready(lattice_mp_block(v_c[0], na_cc[0], params))
    assert out_1.shape == (N, dim)
    assert jnp.allclose(out_1, ref_b[0], atol=1e-4, rtol=1e-4), "single mismatch vs reference"

    print("KERNEL_OK")
</pallas_src>

<mosaic_0001>
module attributes {stable_mosaic.version = 11 : i64} {
  func.func @lattice_mp_kernel(%arg0: i32, %arg1: memref<1x8x128xf32, #tpu.memory_space<vmem>>, %arg2: memref<1x8x8xf32, #tpu.memory_space<vmem>>, %arg3: memref<128x128xf32, #tpu.memory_space<vmem>>, %arg4: memref<1x128xf32, #tpu.memory_space<vmem>>, %arg5: memref<128x128xf32, #tpu.memory_space<vmem>>, %arg6: memref<1x128xf32, #tpu.memory_space<vmem>>, %arg7: memref<128x128xf32, #tpu.memory_space<vmem>>, %arg8: memref<1x128xf32, #tpu.memory_space<vmem>>, %arg9: memref<1x8x128xf32, #tpu.memory_space<vmem>>) attributes {dimension_semantics = [#tpu.dimension_semantics<parallel>], iteration_bounds = array<i64: 4>, scalar_prefetch = 0 : i64, scratch_operands = 0 : i64, tpu.core_type = #tpu.core_type<tc>, window_params = [{transform_indices = @transform_0, window_bounds = array<i64: 1, 8, 128>}, {transform_indices = @transform_1, window_bounds = array<i64: 1, 8, 8>}, {pipeline_mode = #tpu.pipeline_mode<synchronous>, transform_indices = @transform_2, window_bounds = array<i64: 128, 128>}, {pipeline_mode = #tpu.pipeline_mode<synchronous>, transform_indices = @transform_3, window_bounds = array<i64: 1, 128>}, {pipeline_mode = #tpu.pipeline_mode<synchronous>, transform_indices = @transform_4, window_bounds = array<i64: 128, 128>}, {pipeline_mode = #tpu.pipeline_mode<synchronous>, transform_indices = @transform_5, window_bounds = array<i64: 1, 128>}, {pipeline_mode = #tpu.pipeline_mode<synchronous>, transform_indices = @transform_6, window_bounds = array<i64: 128, 128>}, {pipeline_mode = #tpu.pipeline_mode<synchronous>, transform_indices = @transform_7, window_bounds = array<i64: 1, 128>}, {transform_indices = @transform_8, window_bounds = array<i64: 1, 8, 128>}]} {
    %c0 = arith.constant 0 : index
    %c0_0 = arith.constant 0 : index
    %c0_1 = arith.constant 0 : index
    %0 = vector.load %arg1[%c0, %c0_0, %c0_1] : memref<1x8x128xf32, #tpu.memory_space<vmem>>, vector<1x8x128xf32>
    %1 = vector.shape_cast %0 : vector<1x8x128xf32> to vector<8x128xf32>
    %c0_2 = arith.constant 0 : index
    %c0_3 = arith.constant 0 : index
    %2 = vector.load %arg3[%c0_2, %c0_3] : memref<128x128xf32, #tpu.memory_space<vmem>>, vector<128x128xf32>
    %cst = arith.constant dense<0.000000e+00> : vector<8x128xf32>
    %3 = tpu.matmul %1, %2, %cst {dimension_numbers = #tpu.dot_dimension_numbers<[1], [0], [0], [1], [0, 0, 1, 1], [], []>} : vector<8x128xf32>, vector<128x128xf32>, vector<8x128xf32> -> vector<8x128xf32>
    %c0_4 = arith.constant 0 : index
    %c0_5 = arith.constant 0 : index
    %4 = vector.load %arg4[%c0_4, %c0_5] : memref<1x128xf32, #tpu.memory_space<vmem>>, vector<1x128xf32>
    %5 = vector.broadcast %4 : vector<1x128xf32> to vector<8x128xf32>
    %6 = arith.addf %3, %5 : vector<8x128xf32>
    %cst_6 = arith.constant 0.000000e+00 : f32
    %7 = vector.broadcast %cst_6 : f32 to vector<8x128xf32>
    %8 = arith.maximumf %6, %7 : vector<8x128xf32>
    %c0_7 = arith.constant 0 : index
    %c0_8 = arith.constant 0 : index
    %9 = vector.load %arg5[%c0_7, %c0_8] : memref<128x128xf32, #tpu.memory_space<vmem>>, vector<128x128xf32>
    %cst_9 = arith.constant dense<0.000000e+00> : vector<8x128xf32>
    %10 = tpu.matmul %8, %9, %cst_9 {dimension_numbers = #tpu.dot_dimension_numbers<[1], [0], [0], [1], [0, 0, 1, 1], [], []>} : vector<8x128xf32>, vector<128x128xf32>, vector<8x128xf32> -> vector<8x128xf32>
    %c0_10 = arith.constant 0 : index
    %c0_11 = arith.constant 0 : index
    %11 = vector.load %arg6[%c0_10, %c0_11] : memref<1x128xf32, #tpu.memory_space<vmem>>, vector<1x128xf32>
    %12 = vector.broadcast %11 : vector<1x128xf32> to vector<8x128xf32>
    %13 = arith.addf %10, %12 : vector<8x128xf32>
    %cst_12 = arith.constant 0.000000e+00 : f32
    %14 = vector.broadcast %cst_12 : f32 to vector<8x128xf32>
    %15 = arith.maximumf %13, %14 : vector<8x128xf32>
    %16 = arith.addf %1, %15 : vector<8x128xf32>
    %cst_13 = arith.constant 0.000000e+00 : f32
    %17 = vector.broadcast %cst_13 : f32 to vector<8x128xf32>
    %18 = arith.maximumf %16, %17 : vector<8x128xf32>
    %c0_14 = arith.constant 0 : index
    %c0_15 = arith.constant 0 : index
    %19 = vector.load %arg7[%c0_14, %c0_15] : memref<128x128xf32, #tpu.memory_space<vmem>>, vector<128x128xf32>
    %cst_16 = arith.constant dense<0.000000e+00> : vector<8x128xf32>
    %20 = tpu.matmul %18, %19, %cst_16 {dimension_numbers = #tpu.dot_dimension_numbers<[1], [0], [0], [1], [0, 0, 1, 1], [], []>} : vector<8x128xf32>, vector<128x128xf32>, vector<8x128xf32> -> vector<8x128xf32>
    %c0_17 = arith.constant 0 : index
    %c0_18 = arith.constant 0 : index
    %21 = vector.load %arg8[%c0_17, %c0_18] : memref<1x128xf32, #tpu.memory_space<vmem>>, vector<1x128xf32>
    %22 = vector.broadcast %21 : vector<1x128xf32> to vector<8x128xf32>
    %23 = arith.addf %20, %22 : vector<8x128xf32>
    %cst_19 = arith.constant 0.000000e+00 : f32
    %24 = vector.broadcast %cst_19 : f32 to vector<8x128xf32>
    %25 = arith.maximumf %23, %24 : vector<8x128xf32>
    %c0_20 = arith.constant 0 : index
    %c0_21 = arith.constant 0 : index
    %c0_22 = arith.constant 0 : index
    %26 = vector.load %arg2[%c0_20, %c0_21, %c0_22] : memref<1x8x8xf32, #tpu.memory_space<vmem>>, vector<1x8x8xf32>
    %27 = vector.shape_cast %26 : vector<1x8x8xf32> to vector<8x8xf32>
    %cst_23 = arith.constant dense<0.000000e+00> : vector<8x128xf32>
    %28 = tpu.matmul %27, %20, %cst_23 {dimension_numbers = #tpu.dot_dimension_numbers<[1], [0], [0], [1], [0, 0, 1, 1], [], []>} : vector<8x8xf32>, vector<8x128xf32>, vector<8x128xf32> -> vector<8x128xf32>
    %29 = vector.broadcast %21 : vector<1x128xf32> to vector<8x128xf32>
    %30 = arith.addf %28, %29 : vector<8x128xf32>
    %cst_24 = arith.constant 0.000000e+00 : f32
    %31 = vector.broadcast %cst_24 : f32 to vector<8x128xf32>
    %32 = arith.maximumf %30, %31 : vector<8x128xf32>
    %33 = arith.addf %25, %32 : vector<8x128xf32>
    %c0_25 = arith.constant 0 : index
    %c0_26 = arith.constant 0 : index
    %c0_27 = arith.constant 0 : index
    %34 = vector.load %arg9[%c0_25, %c0_26, %c0_27] : memref<1x8x128xf32, #tpu.memory_space<vmem>>, vector<1x8x128xf32>
    %35 = vector.shape_cast %34 : vector<1x8x128xf32> to vector<8x128xf32>
    %36 = vector.shape_cast %33 : vector<8x128xf32> to vector<1x8x128xf32>
    tpu.vector_store %arg9[%c0_25, %c0_26, %c0_27], %36 {strides = array<i32>} : memref<1x8x128xf32, #tpu.memory_space<vmem>>, vector<1x8x128xf32>,
    return
  }
  func.func @transform_0(%arg0: i32) -> (i32, i32, i32) {
    %c0_i32 = arith.constant 0 : i32
    %c0_i32_0 = arith.constant 0 : i32
    %c0_i32_1 = arith.constant 0 : i32
    return %arg0, %c0_i32, %c0_i32_0 : i32, i32, i32
  }
  func.func @transform_1(%arg0: i32) -> (i32, i32, i32) {
    %c0_i32 = arith.constant 0 : i32
    %c0_i32_0 = arith.constant 0 : i32
    %c0_i32_1 = arith.constant 0 : i32
    return %arg0, %c0_i32, %c0_i32_0 : i32, i32, i32
  }
  func.func @transform_2(%arg0: i32) -> (i32, i32) {
    %c0_i32 = arith.constant 0 : i32
    %c0_i32_0 = arith.constant 0 : i32
    %c0_i32_1 = arith.constant 0 : i32
    return %c0_i32, %c0_i32_0 : i32, i32
  }
  func.func @transform_3(%arg0: i32) -> (i32, i32) {
    %c0_i32 = arith.constant 0 : i32
    %c0_i32_0 = arith.constant 0 : i32
    %c0_i32_1 = arith.constant 0 : i32
    return %c0_i32, %c0_i32_0 : i32, i32
  }
  func.func @transform_4(%arg0: i32) -> (i32, i32) {
    %c0_i32 = arith.constant 0 : i32
    %c0_i32_0 = arith.constant 0 : i32
    %c0_i32_1 = arith.constant 0 : i32
    return %c0_i32, %c0_i32_0 : i32, i32
  }
  func.func @transform_5(%arg0: i32) -> (i32, i32) {
    %c0_i32 = arith.constant 0 : i32
    %c0_i32_0 = arith.constant 0 : i32
    %c0_i32_1 = arith.constant 0 : i32
    return %c0_i32, %c0_i32_0 : i32, i32
  }
  func.func @transform_6(%arg0: i32) -> (i32, i32) {
    %c0_i32 = arith.constant 0 : i32
    %c0_i32_0 = arith.constant 0 : i32
    %c0_i32_1 = arith.constant 0 : i32
    return %c0_i32, %c0_i32_0 : i32, i32
  }
  func.func @transform_7(%arg0: i32) -> (i32, i32) {
    %c0_i32 = arith.constant 0 : i32
    %c0_i32_0 = arith.constant 0 : i32
    %c0_i32_1 = arith.constant 0 : i32
    return %c0_i32, %c0_i32_0 : i32, i32
  }
  func.func @transform_8(%arg0: i32) -> (i32, i32, i32) {
    %c0_i32 = arith.constant 0 : i32
    %c0_i32_0 = arith.constant 0 : i32
    %c0_i32_1 = arith.constant 0 : i32
    return %arg0, %c0_i32, %c0_i32_0 : i32, i32, i32
  }
}

</mosaic_0001>

<bundles_post_ra>
// kernel: tpu_custom_call.1
= control target key start
LH: loop header
LB: loop body
LE: loop exit
PB: predicated region body
PF: predicated region fallthrough
CT: control target
= control target key end

     0   :  { %s1293_s0 = inlined_call_operand.hbm [shape: f32[4,8,128], index: 0, kind: input, shape index: {}]   ;;  %s1294_s1 = inlined_call_operand.hbm [shape: f32[4,8,8], index: 1, kind: input, shape index: {}]   ;;  %s1295_s2 = inlined_call_operand.hbm [shape: f32[128,128], index: 2, kind: input, shape index: {}]   ;;  %s1296_s3 = inlined_call_operand.vmem [shape: f32[1,128], index: 3, kind: input, shape index: {}]   ;;  %s1297_s4 = inlined_call_operand.hbm [shape: f32[128,128], index: 4, kind: input, shape index: {}]   ;;  %s1298_s5 = inlined_call_operand.vmem [shape: f32[1,128], index: 5, kind: input, shape index: {}]   ;;  %s1299_s6 = inlined_call_operand.hbm [shape: f32[128,128], index: 6, kind: input, shape index: {}]   ;;  %s1300_s7 = inlined_call_operand.vmem [shape: f32[1,128], index: 7, kind: input, shape index: {}]   ;;  %s1301_s8 = inlined_call_operand.hbm [shape: f32[4,8,128], index: 8, kind: output, shape index: {}]  }
   0x1   :  { %1306 = sst [smem:[#allocation21_spill]] %s1295_s2 }
   0x2   :  { %1307 = sst [smem:[#allocation22_spill]] %s1297_s4 }
   0x3   :  { %1308 = sst [smem:[#allocation23_spill]] %s1299_s6 }
   0x4   :  { %13 = vsyncpa [#allocation3], 0 }
   0x5   :  { %15 = vsyncpa [#allocation3 + $0x1], 0 }
   0x6   :  { %16 = vsyncpa [#allocation6], 0 }
   0x7   :  { %18 = vsyncpa [#allocation6 + $0x1], 0 }
   0x8   :  { %19 = vsyncpa [#allocation9], 0 }
   0x9   :  { %20 = vsyncpa [#allocation4], 0 }
   0xa   :  { %22 = vsyncpa [#allocation4 + $0x1], 0  ;;  %s1092_s27 = smov 0   ;;  %s1094_s28 = smov 0  }
   0xb   :  { %s1096_s29 = smov 0   ;;  %s1098_s30 = smov 0  }
   0xc LB: > { %1309 = sst [smem:[#allocation17_spill]] %s1036_s29  ;;  %s1116_s12 = sadd.s32 4294967295, %s1040_s30   ;;  %s1040_s30 = sphi %s1098_s30, %s1324_s30   ;;  %s1036_s29 = sphi %s1096_s29, %s1326_s29   ;;  %s1032_s28 = sphi %s1094_s28, %s1328_s28   ;;  %s1028_s27 = sphi %s1092_s27, %s1327_s27  }
   0xd   : > { %s1310_s2 = sld [smem:[#allocation21_spill]]  ;;  %p704_p0 = scmp.ge.s32.totalorder %s1040_s30, 1 }
   0xe   : > { %p49_p1 = scmp.eq.s32.totalorder %s1116_s12, 0  ;;  %p237_p2 = scmp.lt.s32.totalorder %s1040_s30, 5 }
   0xf   : > { %s1042_s14 = smov [#allocation7]   ;;  %s1312_s4 = sld [smem:[#allocation22_spill]] }
  0x10   : > { %p1121_p3 = pnand %p704_p0, %p237_p2  ;;  %s250_s15 = sshll.u32 %s1042_s14, 4  ;;  %s251_s15 = int_to_ptr.vmem [resolvable:$true] %s250_s15 }
  0x11   : > { %s1314_s6 = sld [smem:[#allocation23_spill]]  ;;  %s1043_s23 = smov [#allocation8]  }
  0x12   : > { %p743_p4 = pneg %p1121_p3  ;;  %s267_s24 = sshll.u32 %s1043_s23, 4  ;;  %s268_s24 = int_to_ptr.vmem [resolvable:$true] %s267_s24 }
  0x13   : > { %s248_s11 = sshll.u32 %s1310_s2, 4  ;;  %s1044_s25 = smov 128   ;;  %s249_s11 = int_to_ptr.hbm [resolvable:$true] %s248_s11 }
  0x14   : > { %p1132_p5 = pnand %p743_p4, %p49_p1  ;;  %s1045_s26 = smov 8  }
  0x15   : > { %s265_s18 = sshll.u32 %s1312_s4, 4  ;;  %s1046_s9 = smov [#allocation10]   ;;  %s266_s18 = int_to_ptr.hbm [resolvable:$true] %s265_s18 }
  0x16   : > { %746 = dma.hbm_to_vmem [thread:$0]  (!%p1132_p5), %s249_s11, 2048, %s251_s15, [#allocation6], %s1044_s25, %s1044_s25, %s1045_s26  }
  0x17   : > { %s282_s22 = sshll.u32 %s1314_s6, 4  ;;  %s284_s10 = sshll.u32 %s1046_s9, 4  ;;  %s283_s22 = int_to_ptr.hbm [resolvable:$true] %s282_s22  ;;  %s285_s10 = int_to_ptr.vmem [resolvable:$true] %s284_s10 }
  0x18   : > { %749 = dma.hbm_to_vmem [thread:$0]  (!%p1132_p5), %s266_s18, 2048, %s268_s24, [#allocation9], %s1044_s25, %s1044_s25, %s1045_s26  }
  0x19   : > { %752 = dma.hbm_to_vmem [thread:$0]  (!%p1132_p5), %s283_s22, 2048, %s285_s10, [#allocation9], %s1044_s25, %s1044_s25, %s1045_s26  }
  0x1a   : > { %s703_s14 = sadd.s32 4294967294, %s1040_s30   ;;  %s1147_s16 = sadd.s32 1, %s1040_s30  }
  0x1b   : > { %1315 = sst [smem:[#allocation18_spill]] %s1147_s16  ;;  %s35_s17 = sadd.s32 1, %s1036_s29 }
  0x1c   : > { %s32_s11 = ssub.s32 %s1040_s30, %s1147_s16  ;;  %p42_p6 = scmp.ne.s32.totalorder %s1036_s29, %s1032_s28 }
  0x1d   : > { %p33_p7 = scmp.eq.s32.totalorder %s32_s11, 0  ;;  %p43_p8 = scmp.eq.s32.totalorder %s1040_s30, 0 }
  0x1e   : > { %p48_p9 = scmp.ne.s32.totalorder %s1032_s28, %s1028_s27  ;;  %p224_p10 = scmp.eq.s32.totalorder %s1116_s12, 3 }
  0x1f   : > { %s1159_s15 = scalar_select %p33_p7, %s1036_s29, %s35_s17  }
  0x20   : > { %p1161_p11 = por %p43_p8, %p42_p6  ;;  %p1167_p12 = por %p49_p1, %p48_p9 }
  0x21   : > { %1316 = sst [smem:[#allocation19_spill]] %s1159_s15  ;;  %p1171_p13 = por %p224_p10, %p42_p6 }
  0x22   : > { %p230_p0 = scmp.eq.s32.totalorder %s703_s14, 3  ;;  %p767_p2 = scmp.lt.s32.totalorder %s1040_s30, 4 }
  0x23   : > { %s301_s21 = sand.u32 1, %s1036_s29   ;;  %s710_s24 = sshll.u32 %s1040_s30, 3 }
  0x24   : > { %p1177_p4 = por %p230_p0, %p48_p9  ;;  %s709_s23 = sshll.u32 %s301_s21, 3 }
  0x25   : > { %s309_s9 = scalar_lea.hbm %s1293_s0, %s710_s24  ;;  %s305_s17 = scalar_lea.vmem [#allocation2], %s709_s23 }
  0x26   : > { %s1320_s22 = scalar_select %p1177_p4, 1, 0 }
  0x27   : > { %s311_s10 = sshll.u32 %s309_s9, 4  ;;  %s313_s11 = sshll.u32 %s305_s17, 4  ;;  %s312_s10 = int_to_ptr.hbm [resolvable:$true] %s311_s10  ;;  %s314_s11 = int_to_ptr.vmem [resolvable:$true] %s313_s11 }
  0x28   : > { %1321 = sst [smem:[#allocation20_spill]] %s1320_s22  ;;  %p1187_p5 = pnand %p767_p2, %p1161_p11 }
  0x29   : > { %s328_s6 = scalar_lea.hbm %s1294_s1, %s710_s24  ;;  %s320_s15 = sand.u32 1, %s1040_s30  }
  0x2a   : > { %s302_s29 = scalar_lea.sflag [#allocation3], %s301_s21  ;;  %s902_s25 = sshra.s32 %s312_s10, 4  ;;  %s903_s25 = int_to_ptr.hbm [resolvable:$true] %s902_s25 }
  0x2b   : > { %s904_s26 = scalar_lea.hbm %s903_s25, 8  ;;  %p906_p7 = pneg %p1187_p5 }
  0x2c   : > { %p905_p6 = scmp.ne.s32.totalorder %s903_s25, %s904_s26  ;;  %s909_s17 = scalar_lea.hbm %s1293_s0, 32 }
  0x2d   : > { %p910_p10 = scmp.lt.s32.totalorder %s903_s25, %s1293_s0  ;;  %p911_p11 = scmp.lt.s32.totalorder %s909_s17, %s904_s26 }
  0x2e   : > { %p907_p8 = pnand %p906_p7, %p905_p6 }
  0x2f   : > { %p912_p0 = por %p911_p11, %p910_p10 }
  0x30   : > { %p908_p9 = pneg %p907_p8 }
  0x32   : > { %p913_p2 = pnand %p912_p0, %p908_p9 }
  0x34   : > { %916 = shalt.err (!%p913_p2)
}
  0x35   : > { %756 = dma.hbm_to_vmem [thread:$0]  (!%p1187_p5), %s312_s10, 128, %s314_s11, %s302_s29  }
  0x36   : > { %s330_s21 = sshll.u32 %s328_s6, 4  ;;  %s324_s24 = scalar_lea.vmem [#allocation5], %s709_s23  ;;  %s331_s21 = int_to_ptr.hbm [resolvable:$true] %s330_s21 }
  0x37   : > { %s332_s16 = sshll.u32 %s324_s24, 4  ;;  %s321_s22 = scalar_lea.sflag [#allocation6], %s320_s15  ;;  %s333_s16 = int_to_ptr.vmem [resolvable:$true] %s332_s16 }
  0x38   : > { %s932_s18 = sshra.s32 %s331_s21, 4  ;;  %s939_s17 = scalar_lea.hbm %s1294_s1, 32  ;;  %s933_s18 = int_to_ptr.hbm [resolvable:$true] %s932_s18 }
  0x39   : > { %s934_s9 = scalar_lea.hbm %s933_s18, 8  ;;  %p940_p9 = scmp.lt.s32.totalorder %s933_s18, %s1294_s1 }
  0x3a   : > { %p935_p6 = scmp.ne.s32.totalorder %s933_s18, %s934_s9  ;;  %p941_p11 = scmp.lt.s32.totalorder %s939_s17, %s934_s9 }
  0x3c   : > { %p937_p8 = pnand %p935_p6, %p906_p7  ;;  %p942_p0 = por %p941_p11, %p940_p9 }
  0x3e   : > { %p938_p10 = pneg %p937_p8 }
  0x40   : > { %p943_p2 = pnand %p942_p0, %p938_p10 }
  0x42   : > { %946 = shalt.err (!%p943_p2)
}
  0x43   : > { %759 = dma.hbm_to_vmem [thread:$0]  (!%p1187_p5), %s331_s21, 128, %s333_s16, %s321_s22  }
  0x44   : > { %341 = sbr.rel (%p1121_p3) target bundleno = 651 (0x28b), region = 52  ;;  %s1222_s6 = sand.u32 (!%p1121_p3), 1, %s1032_s28  }
  0x45   : > { %s1225_s15 = sshll.u32 (!%p1121_p3), %s1222_s6, 3  ;;  %s344_s23 = scalar_lea.sflag (!%p1121_p3), [#allocation3], %s1222_s6 }
  0x46   : > { %s347_s10 = scalar_lea.vmem (!%p1121_p3), [#allocation2], %s1225_s15 }
  0x49   : > { %1007 = dma.done.wait (%p1167_p12), %s344_s23, 128  }
  0x4a   : > { %1009 = vsyncadd (%p1167_p12), %s344_s23, 4294967168  ;;  %s353_s13 = sand.u32 1, %s1116_s12   ;;  %s357_s22 = scalar_lea.vmem [#allocation5], %s1225_s15 }
  0x4b   : > { %s354_s16 = scalar_lea.sflag [#allocation6], %s353_s13 }
  0x4c   : > { %1011 = dma.done.wait (%p1167_p12), %s354_s16, 128  }
  0x4d   : > { %1013 = vsyncadd (%p1167_p12), %s354_s16, 4294967168 }
  0x4e   : > { %1015 = dma.done.wait (%p49_p1), [#allocation6], 2048  }
  0x4f   : > { %1017 = vsyncadd (%p49_p1), [#allocation6], 4294965248 }
  0x50   : > { %1019 = dma.done.wait (%p49_p1), [#allocation9], 4096  }
  0x51   : > { %1021 = vsyncadd (%p49_p1), [#allocation9], 4294963200  ;;  %v427_v0 = vld [vmem:[#allocation7 + $0x78] sm:$0xff]  ;;  %v426_v1 = vld [vmem:[#allocation7 + $0x70] sm:$0xff]  ;;  %vm539_vm0 = vcmask 64512   ;;  %s722_s18 = sshll.u32 %s1116_s12, 3 }
  0x52   : > { %432 = vmatpush.msra.mxu0 %v427_v0  ;;  %v425_v2 = vld [vmem:[#allocation7 + $0x68] sm:$0xff]  ;;  %v424_v3 = vld [vmem:[#allocation7 + $0x60] sm:$0xff]  ;;  %v468_v4 = vld [vmem:[#allocation8 + $0x78] sm:$0xff]  ;;  %s577_s26 = scalar_lea.hbm %s1301_s8, %s722_s18  ;;  %s410_s17 = scalar_lea.vmem [#allocation11], %s1225_s15 }
  0x53   : > { %v423_v5 = vld [vmem:[#allocation7 + $0x58] sm:$0xff]  ;;  %473 = vmatpush.msra.mxu1 %v468_v4  ;;  %v467_v6 = vld [vmem:[#allocation8 + $0x70] sm:$0xff]  ;;  %v466_v7 = vld [vmem:[#allocation8 + $0x68] sm:$0xff]  ;;  %s579_s2 = sshll.u32 %s410_s17, 4  ;;  %s581_s29 = sshll.u32 %s577_s26, 4  ;;  %s580_s2 = int_to_ptr.vmem [resolvable:$true] %s579_s2  ;;  %s582_s29 = int_to_ptr.hbm [resolvable:$true] %s581_s29 }
  0x54   : > { %433 = vmatpush.msra.mxu0 %v426_v1  ;;  %v422_v8 = vld [vmem:[#allocation7 + $0x50] sm:$0xff]  ;;  %v465_v9 = vld [vmem:[#allocation8 + $0x60] sm:$0xff]  ;;  %v421_v10 = vld [vmem:[#allocation7 + $0x48] sm:$0xff]  ;;  %s567_s23 = scalar_lea.sflag [#allocation4], %s1222_s6  ;;  %s982_s15 = scalar_lea.hbm %s1301_s8, 32 }
  0x55   : > { %474 = vmatpush.msra.mxu1 %v467_v6  ;;  %v464_v11 = vld [vmem:[#allocation8 + $0x58] sm:$0xff]  ;;  %v420_v12 = vld [vmem:[#allocation7 + $0x40] sm:$0xff]  ;;  %v463_v13 = vld [vmem:[#allocation8 + $0x50] sm:$0xff] }
  0x56   : > { %434 = vmatpush.msra.mxu0 %v425_v2  ;;  %v419_v14 = vld [vmem:[#allocation7 + $0x38] sm:$0xff]  ;;  %v462_v15 = vld [vmem:[#allocation8 + $0x48] sm:$0xff]  ;;  %v418_v16 = vld [vmem:[#allocation7 + $0x30] sm:$0xff] }
  0x57   : > { %475 = vmatpush.msra.mxu1 %v466_v7  ;;  %v461_v17 = vld [vmem:[#allocation8 + $0x40] sm:$0xff]  ;;  %v417_v18 = vld [vmem:[#allocation7 + $0x28] sm:$0xff]  ;;  %v460_v19 = vld [vmem:[#allocation8 + $0x38] sm:$0xff] }
  0x58   : > { %435 = vmatpush.msra.mxu0 %v424_v3  ;;  %v416_v20 = vld [vmem:[#allocation7 + $0x20] sm:$0xff]  ;;  %v459_v21 = vld [vmem:[#allocation8 + $0x30] sm:$0xff]  ;;  %v415_v22 = vld [vmem:[#allocation7 + $0x18] sm:$0xff] }
  0x59   : > { %476 = vmatpush.msra.mxu1 %v465_v9  ;;  %v458_v23 = vld [vmem:[#allocation8 + $0x28] sm:$0xff]  ;;  %v414_v24 = vld [vmem:[#allocation7 + $0x10] sm:$0xff]  ;;  %v457_v25 = vld [vmem:[#allocation8 + $0x20] sm:$0xff] }
  0x5a   : > { %436 = vmatpush.msra.mxu0 %v423_v5  ;;  %v413_v26 = vld [vmem:[#allocation7 + $0x8] sm:$0xff]  ;;  %v456_v27 = vld [vmem:[#allocation8 + $0x18] sm:$0xff]  ;;  %v412_v28 = vld [vmem:[#allocation7] sm:$0xff] }
  0x5b   : > { %477 = vmatpush.msra.mxu1 %v464_v11  ;;  %v411_v29 = vld [vmem:[%s347_s10] sm:$0xff]  ;;  %v455_v30 = vld [vmem:[#allocation8 + $0x10] sm:$0xff]  ;;  %v511_v33 = vld [vmem:[#allocation10 + $0x78] sm:$0xff]  ;;  %s976_s10 = sshra.s32 %s582_s29, 4  ;;  %s977_s10 = int_to_ptr.hbm [resolvable:$true] %s976_s10 }
  0x5c   : > { %437 = vmatpush.msra.mxu0 %v422_v8  ;;  %v454_v31 = vld [vmem:[#allocation8 + $0x8] sm:$0xff]  ;;  %v453_v32 = vld [vmem:[#allocation8] sm:$0xff]  ;;  %v510_v34 = vld [vmem:[#allocation10 + $0x70] sm:$0xff]  ;;  %512 = vmatpush.msra.mxu2 %v511_v33  ;;  %s978_s12 = scalar_lea.hbm %s977_s10, 8  ;;  %p983_p5 = scmp.lt.s32.totalorder %s977_s10, %s1301_s8 }
  0x5d   : > { %478 = vmatpush.msra.mxu1 %v463_v13  ;;  %v509_v35 = vld [vmem:[#allocation10 + $0x68] sm:$0xff]  ;;  %v508_v36 = vld [vmem:[#allocation10 + $0x60] sm:$0xff]  ;;  %v507_v37 = vld [vmem:[#allocation10 + $0x58] sm:$0xff]  ;;  %p979_p1 = scmp.ne.s32.totalorder %s977_s10, %s978_s12  ;;  %p984_p7 = scmp.lt.s32.totalorder %s982_s15, %s978_s12 }
  0x5e   : > { %438 = vmatpush.msra.mxu0 %v421_v10  ;;  %513 = vmatpush.msra.mxu2 %v510_v34  ;;  %v506_v38 = vld [vmem:[#allocation10 + $0x50] sm:$0xff]  ;;  %v505_v39 = vld [vmem:[#allocation10 + $0x48] sm:$0xff]  ;;  %v504_v40 = vld [vmem:[#allocation10 + $0x40] sm:$0xff] }
  0x5f   : > { %479 = vmatpush.msra.mxu1 %v462_v15  ;;  %v503_v41 = vld [vmem:[#allocation10 + $0x38] sm:$0xff]  ;;  %v502_v42 = vld [vmem:[#allocation10 + $0x30] sm:$0xff]  ;;  %v501_v43 = vld [vmem:[#allocation10 + $0x28] sm:$0xff]  ;;  %p980_p3 = pnand %p979_p1, %p1171_p13  ;;  %p985_p6 = por %p984_p7, %p983_p5 }
  0x60   : > { %439 = vmatpush.msra.mxu0 %v420_v12  ;;  %514 = vmatpush.msra.mxu2 %v509_v35  ;;  %v809_v44 = vld [vmem:[%s1296_s3] ss:$0 sm:$0xff]  ;;  %v499_v49 = vld [vmem:[#allocation10 + $0x18] sm:$0xff]  ;;  %v498_v50 = vld [vmem:[#allocation10 + $0x10] sm:$0xff] }
  0x61   : > { %480 = vmatpush.msra.mxu1 %v461_v17  ;;  %v500_v48 = vld [vmem:[#allocation10 + $0x20] sm:$0xff]  ;;  %v497_v51 = vld [vmem:[#allocation10 + $0x8] sm:$0xff]  ;;  %v538_v59 = vld [vmem:[%s357_s22] sm:$0xff]  ;;  %p981_p12 = pneg %p980_p3 }
  0x62   : > { %440 = vmatpush.msra.mxu0 %v419_v14  ;;  %515 = vmatpush.msra.mxu2 %v508_v36  ;;  %v496_v52 = vld [vmem:[#allocation10] sm:$0xff] }
  0x63   : > { %481 = vmatpush.msra.mxu1 %v460_v19  ;;  %v810_v53 = vld [vmem:[%s1298_s5] ss:$0 sm:$0xff]  ;;  %p986_p8 = pnand %p985_p6, %p981_p12 }
  0x64   : > { %441 = vmatpush.msra.mxu0 %v418_v16  ;;  %516 = vmatpush.msra.mxu2 %v507_v37  ;;  %v811_v61 = vld [vmem:[%s1300_s7] ss:$0 sm:$0xff] }
  0x65   : > { %482 = vmatpush.msra.mxu1 %v459_v21 }
  0x66   : > { %442 = vmatpush.msra.mxu0 %v417_v18  ;;  %517 = vmatpush.msra.mxu2 %v506_v38 }
  0x67   : > { %483 = vmatpush.msra.mxu1 %v458_v23 }
  0x68   : > { %443 = vmatpush.msra.mxu0 %v416_v20  ;;  %518 = vmatpush.msra.mxu2 %v505_v39 }
  0x69   : > { %484 = vmatpush.msra.mxu1 %v457_v25 }
  0x6a   : > { %444 = vmatpush.msra.mxu0 %v415_v22  ;;  %519 = vmatpush.msra.mxu2 %v504_v40 }
  0x6b   : > { %485 = vmatpush.msra.mxu1 %v456_v27 }
  0x6c   : > { %445 = vmatpush.msra.mxu0 %v414_v24  ;;  %520 = vmatpush.msra.mxu2 %v503_v41 }
  0x6d   : > { %486 = vmatpush.msra.mxu1 %v455_v30 }
  0x6e   : > { %446 = vmatpush.msra.mxu0 %v413_v26  ;;  %521 = vmatpush.msra.mxu2 %v502_v42 }
  0x6f   : > { %487 = vmatpush.msra.mxu1 %v454_v31 }
  0x70   : > { %447 = vmatpush.msra.mxu0 %v412_v28  ;;  %522 = vmatpush.msra.mxu2 %v501_v43 }
  0x71   : > { %448 = vmatmul.f32.vlgmr.msra.gmra.mxu0 %v411_v29  ;;  %488 = vmatpush.msra.mxu1 %v453_v32 }
  0x72   : > { %523 = vmatpush.msra.mxu2 %v500_v48 }
  0x74   : > { %524 = vmatpush.msra.mxu2 %v499_v49 }
  0x76   : > { %525 = vmatpush.msra.mxu2 %v498_v50 }
  0x78   : > { %526 = vmatpush.msra.mxu2 %v497_v51 }
  0x7a   : > { %527 = vmatpush.msra.mxu2 %v496_v52 }
  0xee   : > { %v449_v45 = vpop.f32.mrf.mxu0 }
  0xef   : > { %v450_v46 = vadd.f32 %v809_v44, %v449_v45 }
  0xf1   : > { %v452_v47 = vmax.f32 %v450_v46, 0.0 }
  0xf3   : > { %489 = vmatmul.f32.vlgmr.msra.gmra.mxu1 %v452_v47 }
 0x170   : > { %v490_v54 = vpop.f32.mrf.mxu1 }
 0x171   : > { %v491_v55 = vadd.f32 %v810_v53, %v490_v54 }
 0x173   : > { %v493_v56 = vmax.f32 %v491_v55, 0.0 }
 0x175   : > { %v494_v57 = vadd.f32 %v493_v56, %v411_v29 }
 0x177   : > { %v495_v58 = vmax.f32 %v494_v57, 0.0 }
 0x179   : > { %528 = vmatmul.f32.vlgmr.msra.gmra.mxu2 %v495_v58 }
 0x1fc   : > { %v529_v60 = vpop.f32.mrf.mxu2 }
 0x1fd   : > { %558 = vmatpush.msra.mxu3 %v529_v60  ;;  %v536_v62 = vadd.f32 %v811_v61, %v529_v60 }
 0x1fe   : > { %720 = vmatmul.msk.f32.vlgmr.msra.gmra.mxu3 %vm539_vm0, %v538_v59 }
 0x1ff   : > { %v537_v1 = vmax.f32 %v536_v62, 0.0 }
 0x281   : > { %v560_v63 = vpop.f32.mrf.mxu3 }
 0x282   : > { %v561_v0 = vadd.f32 %v811_v61, %v560_v63 }
 0x284   : > { %v563_v2 = vmax.f32 %v561_v0, 0.0 }
 0x286   : > { %v564_v3 = vadd.f32 %v563_v2, %v537_v1 }
 0x288   : > { %565 = vst [vmem:[%s410_s17] sm:$0xff] %v564_v3 }
 0x289   : > { %989 = shalt.err (!%p986_p8)
}
 0x28a   : > { %741 = dma.vmem_to_hbm [thread:$0]  (%p1171_p13), %s580_s2, 128, %s582_s29, %s567_s23  }
 0x28b PF: > { %p771_p10 = scmp.ge.s32.totalorder %s1040_s30, 2  ;;  %s593_s11 = sand.u32 1, %s1028_s27  }
 0x28c   : > { %s594_s14 = scalar_lea.sflag [#allocation4], %s593_s11 }
 0x28d   : > { %p761_p9 = pnand %p771_p10, %p1177_p4 }
 0x28f   : > { %p762_p11 = pneg %p761_p9 }
 0x291   : > { %1023 = dma.done.wait (%p762_p11), %s594_s14, 128  }
 0x292   : > { %1025 = vsyncadd (%p762_p11), %s594_s14, 4294967168  ;;  %s1324_s30 = sld [smem:[#allocation18_spill]]  ;;  %s1327_s27 = smov %s1032_s28 }
 0x293   : > { %s1325_s4 = sld [smem:[#allocation17_spill]] }
 0x294   : > { %s1326_s29 = sld [smem:[#allocation19_spill]] }
 0x298   : > { %p25_p0 = scmp.ge.s32.totalorder %s1324_s30, 6  }
 0x299   : > { %s1328_s28 = smov %s1325_s4 }
 0x29a   :  { %27 = sbr.rel (!%p25_p0) target bundleno = 12 (0xc), region = 122 }
 0x29f   :  { %600 = vsyncpa [#allocation3], 1 }
 0x2a0   :  { %602 = vsyncpa [#allocation3 + $0x1], 1 }
 0x2a1   :  { %603 = vsyncpa [#allocation6], 1 }
 0x2a2   :  { %605 = vsyncpa [#allocation6 + $0x1], 1 }
 0x2a3   :  { %606 = vsyncpa [#allocation9], 1 }
 0x2a4   :  { %607 = vsyncpa [#allocation4], 1 }
 0x2a5   :  { %609 = vsyncpa [#allocation4 + $0x1], 1 }

</bundles_post_ra>
